<compile_context>
chip_gen: v5e
topology: v5e:2x2
jax: 0.10.0
libtpu: 0.0.40
codegen_flags: <defaults>
</compile_context>

<pallas_src>
import jax
import jax.numpy as jnp
from jax.experimental import pallas as pl
from jax.experimental.pallas import tpu as pltpu

LANE = 128


def _round_up(x, m):
    return (x + m - 1) // m * m


def _largest_aligned_divisor(total, cap):
    """Largest multiple of 128 that divides `total` (itself a multiple of 128)
    and is <= cap."""
    t = (min(cap, total) // LANE) * LANE
    while t > LANE:
        if total % t == 0:
            return t
        t -= LANE
    return LANE


# ---------------------------------------------------------------------------
# Fused kernel: (folded permute+/255+Normalize) linear head  ->  x @ w + b
# ---------------------------------------------------------------------------
def _fused_head_kernel(x_ref, w_ref, b_ref, o_ref):
    # The output block is revisited across the innermost (arbitrary) k axis, and
    # the output dtype is f32, so accumulate directly into o_ref: no scratch
    # accumulator, no finalize copy. Seed with the fused bias at k == 0.
    @pl.when(pl.program_id(2) == 0)
    def _init():
        o_ref[...] = jnp.broadcast_to(b_ref[...], o_ref.shape)

    # Operands stay in their native (bf16) dtype -> full-rate MXU; f32 accumulate
    # comes from preferred_element_type only.
    o_ref[...] += jnp.dot(x_ref[...], w_ref[...], preferred_element_type=jnp.float32)


def fused_permute_normalize_linear(x_nhwc, params, *, tm_default=512, tn_cap=2048,
                                   vmem_budget_bytes=20 * 1024 * 1024):
    """x_nhwc: (N, H, W, C) values in [0, 255]. Returns (N, K) f32."""
    N, H, W, C = x_nhwc.shape
    F = H * W * C
    w = params["w_fused"]          # (Fp, Kp), bf16, padded once at setup
    b = params["b_fused"]          # (1, Kp), f32, padded once at setup
    K = params["out_dim"]
    Fp, Kp = w.shape
    assert params["feat_dim"] == F

    # Lane-dense 2D activation view (no data movement for a contiguous NHWC tensor).
    x2d = x_nhwc.reshape(N, F)
    if x2d.dtype != w.dtype:
        # TODO(synk): feed activations as uint8/bf16 from the producer to drop this cast pass.
        x2d = x2d.astype(w.dtype)
    if Fp != F:
        x2d = jnp.pad(x2d, ((0, 0), (0, Fp - F)))

    # --- tile selection ------------------------------------------------------
    # M: no padding when the whole batch fits a single tile.
    if N <= tm_default:
        tm, Mp = N, N
    else:
        tm = tm_default
        Mp = _round_up(N, tm)
        x2d = jnp.pad(x2d, ((0, Mp - N), (0, 0)))

    # Output dim: one j tile whenever Kp is modest -> activations read from HBM
    # exactly once; otherwise 512-wide (MXU-native) tiles.
    tn = Kp if Kp <= tn_cap else _largest_aligned_divisor(Kp, 512)

    # Reduction dim: biggest tile that divides Fp and keeps the double-buffered
    # working set inside the VMEM budget. When Fp fits, the k axis collapses to a
    # single grid step (one dot per (i, j) tile).
    itemsize = jnp.dtype(w.dtype).itemsize
    out_bytes = 2 * tm * tn * 4 + tn * 4
    tk_cap = max(LANE, (vmem_budget_bytes - out_bytes) // (2 * itemsize * (tm + tn)))
    tk = Fp if Fp <= tk_cap else _largest_aligned_divisor(Fp, tk_cap)

    grid = (Mp // tm, Kp // tn, Fp // tk)

    out = pl.pallas_call(
        _fused_head_kernel,
        out_shape=jax.ShapeDtypeStruct((Mp, Kp), jnp.float32),
        grid_spec=pltpu.PrefetchScalarGridSpec(
            num_scalar_prefetch=0,
            grid=grid,
            in_specs=[
                pl.BlockSpec((tm, tk), lambda i, j, k: (i, k)),   # activations (bf16)
                # TODO(synk): add pipeline_mode=pl.Buffered(3) here if a profile shows
                # exposed weight-stream DMA at very large F.
                pl.BlockSpec((tk, tn), lambda i, j, k: (k, j)),   # streamed weights (bf16)
                pl.BlockSpec((1, tn), lambda i, j, k: (0, j)),    # fused bias (f32, tiny)
            ],
            out_specs=pl.BlockSpec((tm, tn), lambda i, j, k: (i, j)),
        ),
        compiler_params=pltpu.CompilerParams(
            dimension_semantics=("parallel", "parallel", "arbitrary"),
        ),
    )(x2d, w, b)

    if Mp != N or Kp != K:
        out = out[:N, :K]
    return out


# ---------------------------------------------------------------------------
# Full forward, matching PermuteAxesWrapper.forward semantics
# ---------------------------------------------------------------------------
def permute_axes_wrapper_forward(x_nhwc, params):
    # permute + /255 + Normalize are folded into (w_fused, b_fused); one kernel.
    return fused_permute_normalize_linear(x_nhwc, params)


def make_params(key, H, W, C, num_classes):
    kw, _ = jax.random.split(key)
    F = C * H * W

    # The wrapped `model`: flatten(NCHW) -> Linear(F, num_classes).
    w = jax.random.normal(kw, (F, num_classes), dtype=jnp.float32) * 0.02
    b = jnp.zeros((num_classes,), dtype=jnp.float32)

    # transforms.Normalize(mean=[...][:C], std=[...][:C])
    mean = jnp.asarray([0.485, 0.456, 0.406][:C], dtype=jnp.float32)
    std = jnp.asarray([0.229, 0.224, 0.225][:C], dtype=jnp.float32)

    # --- Fold permute(0,3,1,2) + /255 + Normalize into the linear head --------
    #   y[n,k] = sum_{h,w,c} x[n,h,w,c] * w[(c,h,w),k] / (255*std[c])
    #          + b[k] - sum_{c,h,w} (mean[c]/std[c]) * w[(c,h,w),k]
    w_chwk = w.reshape(C, H, W, num_classes)
    inv255std = 1.0 / (255.0 * std)
    w_fused = jnp.transpose(w_chwk * inv255std[:, None, None, None], (1, 2, 0, 3))
    w_fused = w_fused.reshape(F, num_classes)
    b_fused = (b - jnp.einsum("c,chwk->k", mean / std, w_chwk)).reshape(1, num_classes)

    # Pad ONCE here (never per call) and store the streamed weight as bf16:
    # halves weight HBM traffic; accumulation stays f32 in-kernel.
    Fp = _round_up(F, LANE)
    Kp = _round_up(num_classes, LANE)
    w_fused = jnp.pad(w_fused, ((0, Fp - F), (0, Kp - num_classes))).astype(jnp.bfloat16)
    b_fused = jnp.pad(b_fused, ((0, 0), (0, Kp - num_classes)))  # f32: tiny, keeps fold accuracy

    params = {"w_fused": w_fused, "b_fused": b_fused,
              "out_dim": num_classes, "feat_dim": F}
    raw = {"w": w, "b": b, "mean": mean, "std": std}
    return params, raw


if __name__ == "__main__":
    key = jax.random.PRNGKey(0)
    k_x, k_p = jax.random.split(key)

    N, H, W, C = 2, 16, 16, 3          # NHWC input (values in [0, 255])
    num_classes = 8

    x = jax.random.uniform(k_x, (N, H, W, C), dtype=jnp.float32) * 255.0
    params, raw = make_params(k_p, H, W, C, num_classes)

    out = jax.block_until_ready(permute_axes_wrapper_forward(x, params))

    # Reference check in plain f32 JAX, following the original torch op order:
    # permute -> /255 -> Normalize -> flatten(NCHW) -> linear.
    x_nchw = jnp.transpose(x, (0, 3, 1, 2))
    x_norm = (x_nchw / 255.0 - raw["mean"][None, :, None, None]) / raw["std"][None, :, None, None]
    ref = x_norm.reshape(N, C * H * W) @ raw["w"] + raw["b"]

    assert out.shape == (N, num_classes)
    # bf16 activations/weights -> loosened tolerance vs. the f32 reference.
    max_err = float(jnp.max(jnp.abs(out - ref)))
    assert jnp.allclose(out, ref, atol=5e-2, rtol=5e-2), max_err

    print("KERNEL_OK")
</pallas_src>

<mosaic_0001>
module attributes {stable_mosaic.version = 11 : i64} {
  func.func @_fused_head_kernel(%arg0: i32, %arg1: i32, %arg2: i32, %arg3: memref<2x768xbf16, #tpu.memory_space<vmem>>, %arg4: memref<768x128xbf16, #tpu.memory_space<vmem>>, %arg5: memref<1x128xf32, #tpu.memory_space<vmem>>, %arg6: memref<2x128xf32, #tpu.memory_space<vmem>>) attributes {dimension_semantics = [#tpu.dimension_semantics<parallel>, #tpu.dimension_semantics<parallel>, #tpu.dimension_semantics<arbitrary>], iteration_bounds = array<i64: 1, 1, 1>, scalar_prefetch = 0 : i64, scratch_operands = 0 : i64, tpu.core_type = #tpu.core_type<tc>, window_params = [{transform_indices = @transform_0, window_bounds = array<i64: 2, 768>}, {transform_indices = @transform_1, window_bounds = array<i64: 768, 128>}, {transform_indices = @transform_2, window_bounds = array<i64: 1, 128>}, {transform_indices = @transform_3, window_bounds = array<i64: 2, 128>}]} {
    %c0_i32 = arith.constant 0 : i32
    %0 = arith.cmpi eq, %arg2, %c0_i32 : i32
    %1 = arith.extui %0 : i1 to i32
    %c0_i32_0 = arith.constant 0 : i32
    %2 = arith.cmpi ne, %1, %c0_i32_0 : i32
    scf.if %2 {
      %c0_8 = arith.constant 0 : index
      %c0_9 = arith.constant 0 : index
      %9 = vector.load %arg5[%c0_8, %c0_9] : memref<1x128xf32, #tpu.memory_space<vmem>>, vector<1x128xf32>
      %10 = vector.shape_cast %9 : vector<1x128xf32> to vector<1x128xf32>
      %11 = vector.broadcast %10 : vector<1x128xf32> to vector<2x128xf32>
      %c0_10 = arith.constant 0 : index
      %c0_11 = arith.constant 0 : index
      %12 = vector.load %arg6[%c0_10, %c0_11] : memref<2x128xf32, #tpu.memory_space<vmem>>, vector<2x128xf32>
      tpu.vector_store %arg6[%c0_10, %c0_11], %11 {strides = array<i32>} : memref<2x128xf32, #tpu.memory_space<vmem>>, vector<2x128xf32>,
    } else {
    }
    %c0 = arith.constant 0 : index
    %c0_1 = arith.constant 0 : index
    %3 = vector.load %arg6[%c0, %c0_1] : memref<2x128xf32, #tpu.memory_space<vmem>>, vector<2x128xf32>
    %c0_2 = arith.constant 0 : index
    %c0_3 = arith.constant 0 : index
    %4 = vector.load %arg3[%c0_2, %c0_3] : memref<2x768xbf16, #tpu.memory_space<vmem>>, vector<2x768xbf16>
    %c0_4 = arith.constant 0 : index
    %c0_5 = arith.constant 0 : index
    %5 = vector.load %arg4[%c0_4, %c0_5] : memref<768x128xbf16, #tpu.memory_space<vmem>>, vector<768x128xbf16>
    %cst = arith.constant dense<0.000000e+00> : vector<2x128xf32>
    %6 = tpu.matmul %4, %5, %cst {dimension_numbers = #tpu.dot_dimension_numbers<[1], [0], [0], [1], [0, 0, 1, 1], [], []>} : vector<2x768xbf16>, vector<768x128xbf16>, vector<2x128xf32> -> vector<2x128xf32>
    %7 = arith.addf %3, %6 : vector<2x128xf32>
    %c0_6 = arith.constant 0 : index
    %c0_7 = arith.constant 0 : index
    %8 = vector.load %arg6[%c0_6, %c0_7] : memref<2x128xf32, #tpu.memory_space<vmem>>, vector<2x128xf32>
    tpu.vector_store %arg6[%c0_6, %c0_7], %7 {strides = array<i32>} : memref<2x128xf32, #tpu.memory_space<vmem>>, vector<2x128xf32>,
    return
  }
  func.func @transform_0(%arg0: i32, %arg1: i32, %arg2: i32) -> (i32, i32) {
    %c0_i32 = arith.constant 0 : i32
    return %arg0, %arg2 : i32, i32
  }
  func.func @transform_1(%arg0: i32, %arg1: i32, %arg2: i32) -> (i32, i32) {
    %c0_i32 = arith.constant 0 : i32
    return %arg2, %arg1 : i32, i32
  }
  func.func @transform_2(%arg0: i32, %arg1: i32, %arg2: i32) -> (i32, i32) {
    %c0_i32 = arith.constant 0 : i32
    %c0_i32_0 = arith.constant 0 : i32
    return %c0_i32, %arg1 : i32, i32
  }
  func.func @transform_3(%arg0: i32, %arg1: i32, %arg2: i32) -> (i32, i32) {
    %c0_i32 = arith.constant 0 : i32
    return %arg0, %arg1 : i32, i32
  }
}

</mosaic_0001>

<bundles_post_ra>
// kernel: tpu_custom_call.1
= control target key start
LH: loop header
LB: loop body
LE: loop exit
PB: predicated region body
PF: predicated region fallthrough
CT: control target
= control target key end

     0   :  { %8 = vsyncpa [#allocation3], 0  ;;  %s913_s0 = inlined_call_operand.hbm [shape: bf16[2,768], index: 0, kind: input, shape index: {}]   ;;  %s914_s1 = inlined_call_operand.hbm [shape: bf16[768,128], index: 1, kind: input, shape index: {}]   ;;  %s915_s2 = inlined_call_operand.vmem [shape: f32[1,128], index: 2, kind: input, shape index: {}]   ;;  %s916_s3 = inlined_call_operand.hbm [shape: f32[2,128], index: 3, kind: output, shape index: {}]  }
   0x1   :  { %9 = vsyncpa [#allocation6], 0 }
   0x2   :  { %10 = vsyncpa [#allocation4], 0  ;;  %s16_s14 = sshll.u32 %s913_s0, 4  ;;  %s876_s15 = smov [#allocation2]   ;;  %s17_s14 = int_to_ptr.hbm [resolvable:$true] %s16_s14 }
   0x3   :  { %s18_s16 = sshll.u32 %s876_s15, 4  ;;  %s26_s19 = sshll.u32 %s914_s1, 4  ;;  %s19_s16 = int_to_ptr.vmem [resolvable:$true] %s18_s16  ;;  %s27_s19 = int_to_ptr.hbm [resolvable:$true] %s26_s19 }
   0x4   :  { %21 = dma.hbm_to_vmem [thread:$0]  %s17_s14, 96, %s19_s16, [#allocation3]  }
   0x5   :  { %s877_s20 = smov [#allocation5]   ;;  %s878_s22 = smov 64  }
   0x6   :  { %s28_s21 = sshll.u32 %s877_s20, 4  ;;  %s879_s23 = smov 4   ;;  %s29_s21 = int_to_ptr.vmem [resolvable:$true] %s28_s21 }
   0x7   :  { %34 = dma.hbm_to_vmem [thread:$0]  %s27_s19, 6144, %s29_s21, [#allocation6], %s878_s22, %s878_s22, %s879_s23  }
   0x8   :  { %870 = dma.done.wait [#allocation3], 96  }
   0x9   :  { %871 = vsyncadd [#allocation3], 4294967200 }
   0xa   :  { %872 = dma.done.wait [#allocation6], 6144  }
   0xb   :  { %873 = vsyncadd [#allocation6], 4294961152  ;;  %v751_v0 = vld [vmem:[#allocation5 + $0x38] sm:$0xff]  ;;  %v750_v2 = vld [vmem:[#allocation5 + $0x30] sm:$0xff]  ;;  %s880_s24 = smov [#allocation7]   ;;  %s541_s27 = sshll.u32 %s916_s3, 4  ;;  %s542_s27 = int_to_ptr.hbm [resolvable:$true] %s541_s27 }
   0xc   :  { %v759_v1 = vld [vmem:[#allocation5 + $0x78] sm:$0xff]  ;;  %454 = vmatpush.bf16.msra.mxu0 %v751_v0  ;;  %v758_v3 = vld [vmem:[#allocation5 + $0x70] sm:$0xff]  ;;  %v749_v8 = vld [vmem:[#allocation5 + $0x28] sm:$0xff]  ;;  %s539_s25 = sshll.u32 %s880_s24, 4  ;;  %s540_s25 = int_to_ptr.vmem [resolvable:$true] %s539_s25 }
   0xd   :  { %467 = vmatpush.bf16.msra.mxu1 %v759_v1  ;;  %v767_v4 = vld [vmem:[#allocation5 + $0xb8] sm:$0xff]  ;;  %v766_v6 = vld [vmem:[#allocation5 + $0xb0] sm:$0xff]  ;;  %v757_v9 = vld [vmem:[#allocation5 + $0x68] sm:$0xff] }
   0xe   :  { %v775_v5 = vld [vmem:[#allocation5 + $0xf8] sm:$0xff]  ;;  %480 = vmatpush.bf16.msra.mxu2 %v767_v4  ;;  %v774_v7 = vld [vmem:[#allocation5 + $0xf0] sm:$0xff]  ;;  %v765_v10 = vld [vmem:[#allocation5 + $0xa8] sm:$0xff] }
   0xf   :  { %493 = vmatpush.bf16.msra.mxu3 %v775_v5  ;;  %v773_v11 = vld [vmem:[#allocation5 + $0xe8] sm:$0xff]  ;;  %v748_v12 = vld [vmem:[#allocation5 + $0x20] sm:$0xff]  ;;  %v55_v14 = vld [vmem:[#allocation2] sm:$0x3f] }
  0x10   :  { %455 = vmatpush.bf16.msra.mxu0 %v750_v2  ;;  %v756_v13 = vld [vmem:[#allocation5 + $0x60] sm:$0xff]  ;;  %153 = vst [vmem:[#allocation1] ss:$9 sm:$0xff] %v55_v14  ;;  %v747_v17 = vld [vmem:[#allocation5 + $0x18] sm:$0xff]  ;;  %v746_v21 = vld [vmem:[#allocation5 + $0x10] sm:$0xff] }
  0x11   :  { %468 = vmatpush.bf16.msra.mxu1 %v758_v3  ;;  %v764_v15 = vld [vmem:[#allocation5 + $0xa0] sm:$0xff]  ;;  %v755_v18 = vld [vmem:[#allocation5 + $0x58] sm:$0xff]  ;;  %v754_v22 = vld [vmem:[#allocation5 + $0x50] sm:$0xff] }
  0x12   :  { %481 = vmatpush.bf16.msra.mxu2 %v766_v6  ;;  %v772_v16 = vld [vmem:[#allocation5 + $0xe0] sm:$0xff]  ;;  %v763_v19 = vld [vmem:[#allocation5 + $0x98] sm:$0xff]  ;;  %v762_v23 = vld [vmem:[#allocation5 + $0x90] sm:$0xff] }
  0x13   :  { %494 = vmatpush.bf16.msra.mxu3 %v774_v7  ;;  %v771_v20 = vld [vmem:[#allocation5 + $0xd8] sm:$0xff]  ;;  %v770_v24 = vld [vmem:[#allocation5 + $0xd0] sm:$0xff]  ;;  %v745_v25 = vld [vmem:[#allocation5 + $0x8] sm:$0xff] }
  0x14   :  { %456 = vmatpush.bf16.msra.mxu0 %v749_v8  ;;  %v753_v26 = vld [vmem:[#allocation5 + $0x48] sm:$0xff]  ;;  %v744_v29 = vld [vmem:[#allocation5] sm:$0xff]  ;;  %v783_v31 = vld [vmem:[#allocation5 + $0x138] sm:$0xff] }
  0x15   :  { %469 = vmatpush.bf16.msra.mxu1 %v757_v9  ;;  %v761_v27 = vld [vmem:[#allocation5 + $0x88] sm:$0xff]  ;;  %v752_v30 = vld [vmem:[#allocation5 + $0x40] sm:$0xff]  ;;  %v791_v32 = vld [vmem:[#allocation5 + $0x178] sm:$0xff] }
  0x16   :  { %482 = vmatpush.bf16.msra.mxu2 %v765_v10  ;;  %v769_v28 = vld [vmem:[#allocation5 + $0xc8] sm:$0xff]  ;;  %v760_v33 = vld [vmem:[#allocation5 + $0x80] sm:$0xff]  ;;  %v782_v37 = vld [vmem:[#allocation5 + $0x130] sm:$0xff] }
  0x17   :  { %495 = vmatpush.bf16.msra.mxu3 %v773_v11  ;;  %v768_v34 = vld [vmem:[#allocation5 + $0xc0] sm:$0xff]  ;;  %v154_v35 = vld [vmem:[#allocation1] sm:$0xff]  ;;  %v781_v41 = vld [vmem:[#allocation5 + $0x128] sm:$0xff] }
  0x18   :  { %457 = vmatpush.bf16.msra.mxu0 %v748_v12  ;;  %v155_v36 = vld [vmem:[#allocation1 + $0x9] sm:$0xff]  ;;  %v790_v38 = vld [vmem:[#allocation5 + $0x170] sm:$0xff]  ;;  %v156_v39 = vld [vmem:[#allocation1 + $0x12] sm:$0xff] }
  0x19   :  { %470 = vmatpush.bf16.msra.mxu1 %v756_v13  ;;  %v157_v40 = vld [vmem:[#allocation1 + $0x1b] sm:$0xff]  ;;  %v780_v43 = vld [vmem:[#allocation5 + $0x120] sm:$0xff]  ;;  %v779_v45 = vld [vmem:[#allocation5 + $0x118] sm:$0xff] }
  0x1a   :  { %483 = vmatpush.bf16.msra.mxu2 %v764_v15  ;;  %v789_v42 = vld [vmem:[#allocation5 + $0x168] sm:$0xff]  ;;  %v788_v44 = vld [vmem:[#allocation5 + $0x160] sm:$0xff]  ;;  %v787_v46 = vld [vmem:[#allocation5 + $0x158] sm:$0xff] }
  0x1b   :  { %496 = vmatpush.bf16.msra.mxu3 %v772_v16  ;;  %v778_v47 = vld [vmem:[#allocation5 + $0x110] sm:$0xff]  ;;  %v777_v49 = vld [vmem:[#allocation5 + $0x108] sm:$0xff]  ;;  %v776_v51 = vld [vmem:[#allocation5 + $0x100] sm:$0xff] }
  0x1c   :  { %458 = vmatpush.bf16.msra.mxu0 %v747_v17  ;;  %v786_v48 = vld [vmem:[#allocation5 + $0x150] sm:$0xff]  ;;  %v785_v50 = vld [vmem:[#allocation5 + $0x148] sm:$0xff]  ;;  %v784_v52 = vld [vmem:[#allocation5 + $0x140] sm:$0xff] }
  0x1d   :  { %471 = vmatpush.bf16.msra.mxu1 %v755_v18  ;;  %v158_v53 = vld [vmem:[#allocation1 + $0x24] sm:$0xff]  ;;  %v159_v54 = vld [vmem:[#allocation1 + $0x2d] sm:$0xff]  ;;  %v797_v55 = vld [vmem:[%s915_s2] ss:$0 sm:$0xff] }
  0x1e   :  { %484 = vmatpush.bf16.msra.mxu2 %v763_v19  ;;  %53 = vst [vmem:[#allocation7] sm:$0x3] %v797_v55 }
  0x1f   :  { %497 = vmatpush.bf16.msra.mxu3 %v771_v20 }
  0x20   :  { %459 = vmatpush.bf16.msra.mxu0 %v746_v21 }
  0x21   :  { %472 = vmatpush.bf16.msra.mxu1 %v754_v22 }
  0x22   :  { %485 = vmatpush.bf16.msra.mxu2 %v762_v23 }
  0x23   :  { %498 = vmatpush.bf16.msra.mxu3 %v770_v24 }
  0x24   :  { %460 = vmatpush.bf16.msra.mxu0 %v745_v25 }
  0x25   :  { %473 = vmatpush.bf16.msra.mxu1 %v753_v26  ;;  %v54_v6 = vld [vmem:[#allocation7] sm:$0x3] }
  0x26   :  { %486 = vmatpush.bf16.msra.mxu2 %v761_v27 }
  0x27   :  { %499 = vmatpush.bf16.msra.mxu3 %v769_v28 }
  0x28   :  { %461 = vmatpush.bf16.msra.mxu0 %v744_v29 }
  0x29   :  { %474 = vmatpush.bf16.msra.mxu1 %v752_v30 }
  0x2a   :  { %487 = vmatpush.bf16.msra.mxu2 %v760_v33 }
  0x2b   :  { %500 = vmatpush.bf16.msra.mxu3 %v768_v34  ;;  %462 = vmatmul.bf16.vlgmr.msra.gmra.mxu0 %v154_v35 }
  0x2c   :  { %506 = vmatpush.bf16.msrb.mxu0 %v783_v31  ;;  %475 = vmatmul.bf16.vlgmr.msra.gmra.mxu1 %v155_v36 }
  0x2d   :  { %519 = vmatpush.bf16.msrb.mxu1 %v791_v32  ;;  %488 = vmatmul.bf16.vlgmr.msra.gmra.mxu2 %v156_v39 }
  0x2e   :  { %501 = vmatmul.bf16.vlgmr.msra.gmra.mxu3 %v157_v40 }
  0x30   :  { %507 = vmatpush.bf16.msrb.mxu0 %v782_v37 }
  0x31   :  { %520 = vmatpush.bf16.msrb.mxu1 %v790_v38 }
  0x34   :  { %508 = vmatpush.bf16.msrb.mxu0 %v781_v41 }
  0x35   :  { %521 = vmatpush.bf16.msrb.mxu1 %v789_v42 }
  0x38   :  { %509 = vmatpush.bf16.msrb.mxu0 %v780_v43 }
  0x39   :  { %522 = vmatpush.bf16.msrb.mxu1 %v788_v44 }
  0x3c   :  { %510 = vmatpush.bf16.msrb.mxu0 %v779_v45 }
  0x3d   :  { %523 = vmatpush.bf16.msrb.mxu1 %v787_v46 }
  0x40   :  { %511 = vmatpush.bf16.msrb.mxu0 %v778_v47 }
  0x41   :  { %524 = vmatpush.bf16.msrb.mxu1 %v786_v48 }
  0x44   :  { %512 = vmatpush.bf16.msrb.mxu0 %v777_v49 }
  0x45   :  { %525 = vmatpush.bf16.msrb.mxu1 %v785_v50 }
  0x48   :  { %513 = vmatpush.bf16.msrb.mxu0 %v776_v51 }
  0x49   :  { %526 = vmatpush.bf16.msrb.mxu1 %v784_v52 }
  0x4b   :  { %514 = vmatmul.bf16.vlgmr.msrb.gmra.mxu0 %v158_v53 }
  0x4c   :  { %527 = vmatmul.bf16.vlgmr.msrb.gmra.mxu1 %v159_v54 }
  0xa8   :  { %v463_v56 = vpop.f32.mrf.mxu0 }
  0xa9   :  { %v476_v57 = vpop.f32.mrf.mxu1 }
  0xaa   :  { %v477_v0 = vadd.f32 %v476_v57, %v463_v56 }
  0xb0   :  { %v465_v58 = vpop.f32.mrf.mxu0  ;;  %v489_v60 = vpop.f32.mrf.mxu2 }
  0xb1   :  { %v478_v59 = vpop.f32.mrf.mxu1  ;;  %v502_v61 = vpop.f32.mrf.mxu3  ;;  %v490_v1 = vadd.f32 %v489_v60, %v477_v0 }
  0xb3   :  { %v503_v2 = vadd.f32 %v502_v61, %v490_v1 }
  0xb8   :  { %v491_v62 = vpop.f32.mrf.mxu2 }
  0xb9   :  { %v504_v63 = vpop.f32.mrf.mxu3 }
  0xc8   :  { %v515_v3 = vpop.f32.mrf.mxu0 }
  0xc9   :  { %v528_v4 = vpop.f32.mrf.mxu1  ;;  %v516_v5 = vadd.f32 %v515_v3, %v503_v2 }
  0xcb   :  { %v529_v7 = vadd.f32 %v528_v4, %v516_v5 }
  0xcd   :  { %v532_v8 = vadd.f32 %v529_v7, %v54_v6 }
  0xcf   :  { %533 = vst [vmem:[#allocation7] sm:$0x3] %v532_v8 }
  0xd0   :  { %v517_v9 = vpop.f32.mrf.mxu0  ;;  %544 = dma.vmem_to_hbm [thread:$0]  %s540_s25, 32, %s542_s27, [#allocation4]  }
  0xd1   :  { %v530_v10 = vpop.f32.mrf.mxu1 }
  0xd2   :  { %874 = dma.done.wait [#allocation4], 32  }
  0xd3   :  { %875 = vsyncadd [#allocation4], 4294967264 }
  0xd4   :  { %549 = vsyncpa [#allocation3], 1 }
  0xd5   :  { %550 = vsyncpa [#allocation6], 1 }
  0xd6   :  { %551 = vsyncpa [#allocation4], 1 }

</bundles_post_ra>
